<compile_context>
chip_gen: v7x
topology: tpu7x:2x2x1
jax: 0.10.0
libtpu: 0.0.40
codegen_flags: <defaults>
</compile_context>

<pallas_src>
import functools

import jax
import jax.numpy as jnp
from jax.experimental import pallas as pl
from jax.experimental.pallas import tpu as pltpu

_LANE = 128
_BLOCK_BUDGET = 8 * 1024 * 1024        # per-step (in + out) block bytes
_VMEM_LIMIT = 32 * 1024 * 1024         # covers 2x double buffering on v5e/v6e/v7x
_MAX_LANE_TILE = 1024


def _round_up(a, b):
    return ((a + b - 1) // b) * b


def _pick_lane_tile(nc_pad):
    """Largest multiple of 128 that divides nc_pad and is <= _MAX_LANE_TILE."""
    m = nc_pad // _LANE
    best = 1
    for k in range(1, min(m, _MAX_LANE_TILE // _LANE) + 1):
        if m % k == 0:
            best = k
    return _LANE * best


def _maxpool_kernel(x_ref, o_ref, *, kh):
    """x_ref: (toh, kh, out_w, kw, lt) VMEM tile; o_ref: (toh, out_w, lt)."""
    x = x_ref[...]                           # single full-block load
    acc = x[:, 0]                            # (toh, out_w, kw, lt)
    for r in range(1, kh):                   # static unrolled: elementwise VPU max
        acc = jnp.maximum(acc, x[:, r])
    o_ref[...] = jnp.max(acc, axis=2)        # reduce kw taps (sublane axis, XLU)


def max_pool2d(x, kernel_size):
    """Pallas max-pool matching MaxPoolingFunction.forward (stride = kernel)."""
    if isinstance(kernel_size, int):
        kh = kw = kernel_size
    else:
        kh, kw = kernel_size

    n, c, h, w = x.shape
    out_h, out_w = h // kh, w // kw
    nc = n * c

    if out_h == 0 or out_w == 0:
        return jnp.zeros((n, c, out_h, out_w), x.dtype)

    # F.unfold with stride == kernel_size floors: drop remainder rows/cols.
    x = x[:, :, : out_h * kh, : out_w * kw]

    # Single relayout: (N,C,H,W) -> (H,W,N,C) -> (out_h, kh, out_w, kw, NC).
    xt = jnp.transpose(x, (2, 3, 0, 1)).reshape(out_h, kh, out_w, kw, nc)

    # Pad the channel (lane) axis to a multiple of 128 only when needed.
    nc_pad = _round_up(nc, _LANE)
    if nc_pad != nc:
        # Padded lanes are dropped after the call; max never mixes them with
        # real output positions, so zero padding is safe.
        xt = jnp.pad(xt, ((0, 0), (0, 0), (0, 0), (0, 0), (0, nc_pad - nc)))

    lt = _pick_lane_tile(nc_pad)
    lane_tiles = nc_pad // lt

    # Row tile: largest divisor of out_h whose (in + out) block fits the
    # budget.  Account for sublane padding of the small kw axis in VMEM.
    itemsize = jnp.dtype(x.dtype).itemsize
    sub = max(8, 32 // itemsize)             # sublane granularity (8/16/32)
    in_bytes_per_row = kh * out_w * _round_up(kw, sub) * lt * itemsize
    out_bytes_per_row = _round_up(out_w, sub) * lt * itemsize
    bytes_per_row = in_bytes_per_row + out_bytes_per_row

    divisors = [d for d in range(1, out_h + 1) if out_h % d == 0]
    fitting = [d for d in divisors if d * bytes_per_row <= _BLOCK_BUDGET] or [1]
    toh = max(fitting)
    # Keep >= 2 grid steps along a parallel axis when possible (v7x has 2 TCs).
    if lane_tiles == 1 and out_h // toh < 2 and out_h >= 2:
        two_step = [d for d in fitting if out_h // d >= 2]
        if two_step:
            toh = max(two_step)

    grid = (out_h // toh, lane_tiles)
    num_taps = kh * kw

    kernel = functools.partial(_maxpool_kernel, kh=kh)

    cost = pl.CostEstimate(
        flops=(num_taps - 1) * out_h * out_w * nc_pad,
        transcendentals=0,
        bytes_accessed=(num_taps + 1) * out_h * out_w * nc_pad * itemsize,
    )

    out_pad = pl.pallas_call(
        kernel,
        out_shape=jax.ShapeDtypeStruct((out_h, out_w, nc_pad), x.dtype),
        grid=grid,
        in_specs=[
            pl.BlockSpec(
                (toh, kh, out_w, kw, lt),
                lambda i, j: (i, 0, 0, 0, j),
            ),
        ],
        out_specs=pl.BlockSpec((toh, out_w, lt), lambda i, j: (i, 0, j)),
        compiler_params=pltpu.CompilerParams(
            dimension_semantics=("parallel", "parallel"),
            vmem_limit_bytes=_VMEM_LIMIT,
        ),
        cost_estimate=cost,
    )(xt)

    # Drop lane padding and restore NCHW.
    out = out_pad[:, :, :nc]
    out = out.reshape(out_h, out_w, n, c).transpose(2, 3, 0, 1)
    return out


def _reference_max_pool2d(x, kernel_size):
    """Plain-JAX reference mirroring the PyTorch unfold/max implementation."""
    kh, kw = kernel_size
    n, c, h, w = x.shape
    out_h, out_w = h // kh, w // kw
    xc = x[:, :, : out_h * kh, : out_w * kw]
    return xc.reshape(n, c, out_h, kh, out_w, kw).max(axis=(3, 5))


if __name__ == "__main__":
    key = jax.random.PRNGKey(0)
    batch, channels, height, width = 2, 4, 16, 16
    kernel_size = (2, 2)

    x = jax.random.normal(key, (batch, channels, height, width), dtype=jnp.float32)

    out = max_pool2d(x, kernel_size)
    out = jax.block_until_ready(out)

    ref = _reference_max_pool2d(x, kernel_size)

    kh, kw = kernel_size
    expected_shape = (batch, channels, height // kh, width // kw)
    assert out.shape == expected_shape, (out.shape, expected_shape)
    assert out.dtype == x.dtype
    assert jnp.allclose(out, ref), "mismatch vs reference"

    print("KERNEL_OK")
</pallas_src>

<mosaic_0001>
module attributes {stable_mosaic.version = 11 : i64} {
  func.func @_maxpool_kernel(%arg0: i32, %arg1: i32, %arg2: memref<4x2x8x2x128xf32, #tpu.memory_space<vmem>>, %arg3: memref<4x8x128xf32, #tpu.memory_space<vmem>>) attributes {dimension_semantics = [#tpu.dimension_semantics<parallel>, #tpu.dimension_semantics<parallel>], iteration_bounds = array<i64: 2, 1>, scalar_prefetch = 0 : i64, scratch_operands = 0 : i64, tpu.core_type = #tpu.core_type<tc>, window_params = [{transform_indices = @transform_0, window_bounds = array<i64: 4, 2, 8, 2, 128>}, {transform_indices = @transform_1, window_bounds = array<i64: 4, 8, 128>}]} {
    %c0 = arith.constant 0 : index
    %c0_0 = arith.constant 0 : index
    %c0_1 = arith.constant 0 : index
    %c0_2 = arith.constant 0 : index
    %c0_3 = arith.constant 0 : index
    %0 = vector.load %arg2[%c0, %c0_0, %c0_1, %c0_2, %c0_3] : memref<4x2x8x2x128xf32, #tpu.memory_space<vmem>>, vector<4x2x8x2x128xf32>
    %1 = vector.extract_strided_slice %0 {offsets = [0, 0, 0, 0, 0], sizes = [4, 1, 8, 2, 128], strides = [1, 1, 1, 1, 1]} : vector<4x2x8x2x128xf32> to vector<4x1x8x2x128xf32>
    %2 = vector.shape_cast %1 : vector<4x1x8x2x128xf32> to vector<4x8x2x128xf32>
    %3 = vector.extract_strided_slice %0 {offsets = [0, 1, 0, 0, 0], sizes = [4, 1, 8, 2, 128], strides = [1, 1, 1, 1, 1]} : vector<4x2x8x2x128xf32> to vector<4x1x8x2x128xf32>
    %4 = vector.shape_cast %3 : vector<4x1x8x2x128xf32> to vector<4x8x2x128xf32>
    %5 = arith.maximumf %2, %4 : vector<4x8x2x128xf32>
    %cst = arith.constant dense<0xFF800000> : vector<4x8x128xf32>
    %6 = vector.multi_reduction <maximumf>, %5, %cst [2] : vector<4x8x2x128xf32> to vector<4x8x128xf32>
    %c0_4 = arith.constant 0 : index
    %c0_5 = arith.constant 0 : index
    %c0_6 = arith.constant 0 : index
    %7 = vector.load %arg3[%c0_4, %c0_5, %c0_6] : memref<4x8x128xf32, #tpu.memory_space<vmem>>, vector<4x8x128xf32>
    tpu.vector_store %arg3[%c0_4, %c0_5, %c0_6], %6 {strides = array<i32>} : memref<4x8x128xf32, #tpu.memory_space<vmem>>, vector<4x8x128xf32>,
    return
  }
  func.func @transform_0(%arg0: i32, %arg1: i32) -> (i32, i32, i32, i32, i32) {
    %c0_i32 = arith.constant 0 : i32
    %c0_i32_0 = arith.constant 0 : i32
    %c0_i32_1 = arith.constant 0 : i32
    %c0_i32_2 = arith.constant 0 : i32
    return %arg0, %c0_i32, %c0_i32_0, %c0_i32_1, %arg1 : i32, i32, i32, i32, i32
  }
  func.func @transform_1(%arg0: i32, %arg1: i32) -> (i32, i32, i32) {
    %c0_i32 = arith.constant 0 : i32
    %c0_i32_0 = arith.constant 0 : i32
    return %arg0, %c0_i32, %arg1 : i32, i32, i32
  }
}

</mosaic_0001>

<bundles_post_ra>
// kernel: tpu_custom_call.1
= control target key start
LH: loop header
LB: loop body
LE: loop exit
PB: predicated region body
PF: predicated region fallthrough
CT: control target
= control target key end

     0   :  { %6 = vsyncpa [#allocation3], 0  ;;  %s1175_s0 = inlined_call_operand.hbm [shape: f32[8,2,8,2,128], index: 0, kind: input, shape index: {}]   ;;  %s1176_s1 = inlined_call_operand.hbm [shape: f32[8,8,128], index: 1, kind: output, shape index: {}]  }
   0x1   :  { %8 = vsyncpa [#allocation3 + $0x1], 0 }
   0x2   :  { %9 = vsyncpa [#allocation4], 0 }
   0x3   :  { %11 = vsyncpa [#allocation4 + $0x1], 0  ;;  %s866_s6 = smov 0   ;;  %s868_s7 = smov 0  }
   0x4   :  { %s870_s8 = smov 0   ;;  %s872_s9 = smov 0  }
   0x5   :  { %s874_s10 = smov 0   ;;  %s876_s11 = smov 0  }
   0x6 LB: > { %s651_s12 = sadd.s32 4294967295, %s848_s11   ;;  %s652_s13 = sadd.s32 4294967294, %s848_s11   ;;  %s848_s11 = sphi %s876_s11, %s17_s11   ;;  %s844_s10 = sphi %s874_s10, %s1191_s10   ;;  %s840_s9 = sphi %s872_s9, %s1190_s9   ;;  %s836_s8 = sphi %s870_s8, %s1189_s8   ;;  %s832_s7 = sphi %s868_s7, %s1188_s7   ;;  %s828_s6 = sphi %s866_s6, %s1187_s6  }
   0x7   : > { %s29_s14 = sadd.s32 1, %s844_s10  ;;  %s38_s15 = sadd.s32 1, %s836_s8 }
   0x8   : > { %p31_p0 = scmp.ge.s32.totalorder %s29_s14, 2  ;;  %p45_p1 = scmp.ne.s32.totalorder %s836_s8, %s832_s7 }
   0x9   : > { %p46_p2 = scmp.eq.s32.totalorder %s848_s11, 0  ;;  %p51_p3 = scmp.ne.s32.totalorder %s832_s7, %s828_s6 }
   0xa   : > { %s1193_s14 = smov (%p31_p0, %s29_s14), 0  ;;  %p52_p5 = scmp.eq.s32.totalorder %s651_s12, 0 }
   0xb   : > { %p907_p4 = por %p46_p2, %p45_p1  ;;  %s33_s17 = ssub.s32 %s844_s10, %s1193_s14 }
   0xc   : > { %p77_p6 = scmp.eq.s32.totalorder %s651_s12, 1  ;;  %p36_p7 = scmp.eq.s32.totalorder %s33_s17, 0 }
   0xd   : > { %p913_p8 = por %p52_p5, %p51_p3  ;;  %p83_p10 = scmp.eq.s32.totalorder %s652_s13, 1 }
   0xe   : > { %p917_p9 = por %p77_p6, %p45_p1  ;;  %p682_p13 = scmp.lt.s32.totalorder %s848_s11, 2 }
   0xf   : > { %s922_s20 = scalar_select %p36_p7, %s836_s8, %s38_s15  }
  0x10   : > { %s1180_s19 = scalar_select %p917_p9, 1, 0 }
  0x11   : > { %p924_p11 = por %p83_p10, %p51_p3  ;;  %s103_s22 = sand.u32 1, %s836_s8  }
  0x12   : > { %s655_s23 = sshll.u32 %s103_s22, 7  ;;  %s668_s24 = sshll.u32 %s844_s10, 11 }
  0x13   : > { %s1181_s21 = scalar_select %p924_p11, 1, 0 }
  0x14   : > { %s935_s27 = scalar_lea.hbm %s1175_s0, %s668_s24  ;;  %s107_s28 = scalar_lea.vmem [#allocation2], %s655_s23 }
  0x15   : > { %s116_s29 = sshll.u32 %s107_s28, 4  ;;  %p941_p0 = pnand %p682_p13, %p907_p4  ;;  %s937_s29 = int_to_ptr.vmem [resolvable:$true] %s116_s29 }
  0x16   : > { %s946_s2 = scalar_lea.sflag [#allocation3], %s103_s22  ;;  %s736_s3 = scalar_lea.hbm %s935_s27, 2048 }
  0x17   : > { %p737_p2 = scmp.ne.s32.totalorder %s935_s27, %s736_s3  ;;  %p738_p3 = pneg %p941_p0 }
  0x18   : > { %s741_s12 = scalar_lea.hbm %s1175_s0, 4096  ;;  %p742_p4 = scmp.lt.u32.totalorder %s935_s27, %s1175_s0 }
  0x19   : > { %p739_p5 = pnand %p738_p3, %p737_p2  ;;  %p743_p7 = scmp.lt.u32.totalorder %s741_s12, %s736_s3 }
  0x1a   : > { %p745_p13 = scmp.lt.u32.totalorder %s736_s3, %s935_s27 }
  0x1b   : > { %p740_p6 = pneg %p739_p5  ;;  %p744_p10 = por %p743_p7, %p742_p4 }
  0x1d   : > { %p746_p12 = por %p745_p13, %p744_p10 }
  0x1f   : > { %p747_p1 = pnand %p746_p12, %p740_p6 }
  0x21   : > { %750 = shalt.err (!%p747_p1)
}
  0x22   : > { %s751_s16 = scalar_lea.vmem %s937_s29, 2048  ;;  %s850_s17 = smov [#allocation2]  }
  0x23   : > { %p752_p2 = scmp.ne.s32.totalorder %s937_s29, %s751_s16  ;;  %s756_s22 = sshll.u32 %s850_s17, 4  ;;  %s757_s22 = int_to_ptr.vmem [resolvable:$false] %s756_s22 }
  0x24   : > { %s758_s23 = scalar_lea.vmem %s757_s22, 4096  ;;  %p759_p9 = scmp.lt.s32.totalorder %s937_s29, %s757_s22 }
  0x25   : > { %p754_p5 = pnand %p752_p2, %p738_p3  ;;  %p760_p4 = scmp.lt.s32.totalorder %s758_s23, %s751_s16 }
  0x27   : > { %p755_p11 = pneg %p754_p5  ;;  %p761_p7 = por %p760_p4, %p759_p9 }
  0x29   : > { %p762_p10 = pnand %p761_p7, %p755_p11 }
  0x2b   : > { %765 = shalt.err (!%p762_p10)
}
  0x2c   : > { %s851_s24 = smov 32   ;;  %s852_s25 = smov 2  }
  0x2d   : > { %677 = dma.hbm_to_vmem [thread:$0]  (!%p941_p0), %s935_s27, 2048, %s937_s29, %s946_s2, %s851_s24, %s851_s24, %s852_s25  }
  0x2e   : > { %p124_p12 = scmp.lt.s32.totalorder %s848_s11, 3  ;;  %p1183_p1 = scmp.ge.s32.totalorder %s848_s11, 1 }
  0x30   : > { %p125_p3 = pnand %p1183_p1, %p124_p12 }
  0x31   : > { %s978_s26 = sand.u32 (!%p125_p3), 1, %s832_s7  }
  0x32   : > { %128 = sbr.rel (%p125_p3) target bundleno = 154 (0x9a), region = 24  ;;  %s660_s28 = sshll.u32 (!%p125_p3), %s978_s26, 7 }
  0x33   : > { %s131_s3 = scalar_lea.sflag (!%p125_p3), [#allocation3], %s978_s26  ;;  %s982_s4 = scalar_lea.vmem (!%p125_p3), [#allocation2], %s660_s28 }
  0x39   : > { %819 = dma.done.wait (%p913_p8), %s131_s3, 2048  }
  0x3a   : > { %821 = vsyncadd (%p913_p8), %s131_s3, 4294965248  ;;  %vm251_vm0 = vcmask 1041408   ;;  %v155_v0 = vld [vmem:[%s982_s4] sm:$0x3]  ;;  %v156_v1 = vld [vmem:[%s982_s4 + $0x2] sm:$0x3] }
  0x3b   : > { %v157_v2 = vld [vmem:[%s982_s4 + $0x4] sm:$0x3]  ;;  %v158_v3 = vld [vmem:[%s982_s4 + $0x6] sm:$0x3]  ;;  %v159_v4 = vld [vmem:[%s982_s4 + $0x8] sm:$0x3] }
  0x3c   : > { %v160_v5 = vld [vmem:[%s982_s4 + $0xa] sm:$0x3]  ;;  %v161_v6 = vld [vmem:[%s982_s4 + $0xc] sm:$0x3]  ;;  %v162_v7 = vld [vmem:[%s982_s4 + $0xe] sm:$0x3] }
  0x3d   : > { %v163_v8 = vld [vmem:[%s982_s4 + $0x10] sm:$0x3]  ;;  %v164_v9 = vld [vmem:[%s982_s4 + $0x12] sm:$0x3]  ;;  %v165_v10 = vld [vmem:[%s982_s4 + $0x14] sm:$0x3] }
  0x3e   : > { %v166_v11 = vld [vmem:[%s982_s4 + $0x16] sm:$0x3]  ;;  %v219_v12 = vmax.f32 %v155_v0, %v163_v8  ;;  %v167_v13 = vld [vmem:[%s982_s4 + $0x18] sm:$0x3]  ;;  %v168_v14 = vld [vmem:[%s982_s4 + $0x1a] sm:$0x3]  ;;  %v220_v16 = vmax.f32 %v156_v1, %v164_v9  ;;  %v221_v17 = vmax.f32 %v157_v2, %v165_v10 }
  0x3f   : > { %v169_v15 = vld [vmem:[%s982_s4 + $0x1c] sm:$0x3]  ;;  %v222_v18 = vmax.f32 %v158_v3, %v166_v11  ;;  %v170_v19 = vld [vmem:[%s982_s4 + $0x1e] sm:$0x3]  ;;  %v223_v20 = vmax.f32 %v159_v4, %v167_v13  ;;  %v224_v21 = vmax.f32 %v160_v5, %v168_v14  ;;  %vm508_vm1 = vcmask 1041409   ;;  %s661_s18 = sshll.u32 %s978_s26, 5 }
  0x40   : > { %v225_v22 = vmax.f32 %v161_v6, %v169_v15  ;;  %v252_v23 = vsel %vm251_vm0, %v219_v12, -inf  ;;  %v226_v24 = vmax.f32 %v162_v7, %v170_v19  ;;  %v259_v26 = vsel %vm251_vm0, %v220_v16, -inf  ;;  %v171_v60 = vld [vmem:[%s982_s4 + $0x20] sm:$0x3]  ;;  %v172_v61 = vld [vmem:[%s982_s4 + $0x22] sm:$0x3] }
  0x41   : > { %v253_v25 = vrot.slane %v252_v23, 4  ;;  %v266_v27 = vsel %vm251_vm0, %v221_v17, -inf  ;;  %v260_v28 = vrot.slane %v259_v26, 4  ;;  %v273_v30 = vsel %vm251_vm0, %v222_v18, -inf  ;;  %v173_v2 = vld [vmem:[%s982_s4 + $0x24] sm:$0x3] }
  0x42   : > { %v267_v29 = vrot.slane %v266_v27, 4  ;;  %v280_v31 = vsel %vm251_vm0, %v223_v20, -inf  ;;  %v274_v33 = vrot.slane %v273_v30, 4  ;;  %v287_v35 = vsel %vm251_vm0, %v224_v21, -inf  ;;  %v174_v3 = vld [vmem:[%s982_s4 + $0x26] sm:$0x3] }
  0x43   : > { %v254_v32 = vmax.f32 %v252_v23, %v253_v25  ;;  %v281_v34 = vrot.slane %v280_v31, 4  ;;  %v261_v36 = vmax.f32 %v259_v26, %v260_v28  ;;  %v288_v38 = vrot.slane %v287_v35, 4  ;;  %v179_v4 = vld [vmem:[%s982_s4 + $0x30] sm:$0x3]  ;;  %v175_v9 = vld [vmem:[%s982_s4 + $0x28] sm:$0x3] }
  0x44   : > { %v268_v37 = vmax.f32 %v266_v27, %v267_v29  ;;  %v294_v39 = vsel %vm251_vm0, %v225_v22, -inf  ;;  %vm510_vm2 = vcmask 1042434   ;;  %v275_v41 = vmax.f32 %v273_v30, %v274_v33  ;;  %v176_v10 = vld [vmem:[%s982_s4 + $0x2a] sm:$0x3]  ;;  %v180_v11 = vld [vmem:[%s982_s4 + $0x32] sm:$0x3] }
  0x45   : > { %v255_v40 = vrot.slane %v254_v32, 2  ;;  %v282_v42 = vmax.f32 %v280_v31, %v281_v34  ;;  %v295_v43 = vrot.slane %v294_v39, 4  ;;  %vm512_vm3 = vcmask 1043459   ;;  %v177_v16 = vld [vmem:[%s982_s4 + $0x2c] sm:$0x3]  ;;  %s1040_s27 = scalar_lea.vmem [#allocation5], %s661_s18 }
  0x46   : > { %v262_v44 = vrot.slane %v261_v36, 2  ;;  %v269_v45 = vrot.slane %v268_v37, 2  ;;  %v289_v46 = vmax.f32 %v287_v35, %v288_v38  ;;  %v301_v47 = vsel %vm251_vm0, %v226_v24, -inf  ;;  %v181_v17 = vld [vmem:[%s982_s4 + $0x34] sm:$0x3]  ;;  %s566_s29 = sshll.u32 %s1040_s27, 4  ;;  %s1118_s29 = int_to_ptr.vmem [resolvable:$true] %s566_s29 }
  0x47   : > { %vm514_vm4 = vcmask 1044484   ;;  %v256_v48 = vmax.f32 %v254_v32, %v255_v40  ;;  %v276_v49 = vrot.slane %v275_v41, 2  ;;  %v283_v50 = vrot.slane %v282_v42, 2  ;;  %v182_v18 = vld [vmem:[%s982_s4 + $0x36] sm:$0x3]  ;;  %s669_s30 = sshll.u32 %s840_s9, 9 }
  0x48   : > { %v296_v51 = vmax.f32 %v294_v39, %v295_v43  ;;  %vm516_vm5 = vcmask 1045509   ;;  %v263_v52 = vmax.f32 %v261_v36, %v262_v44  ;;  %v270_v53 = vmax.f32 %v268_v37, %v269_v45  ;;  %v183_v22 = vld [vmem:[%s982_s4 + $0x38] sm:$0x3]  ;;  %v184_v23 = vld [vmem:[%s982_s4 + $0x3a] sm:$0x3]  ;;  %s1124_s12 = scalar_lea.hbm %s1176_s1, %s669_s30  ;;  %s552_s9 = scalar_lea.sflag [#allocation4], %s978_s26 }
  0x49   : > { %v290_v54 = vrot.slane %v289_v46, 2  ;;  %v302_v55 = vrot.slane %v301_v47, 4  ;;  %vm518_vm6 = vcmask 1046534   ;;  %v257_v56 = vrot.slane %v256_v48, 1  ;;  %v178_v28 = vld [vmem:[%s982_s4 + $0x2e] sm:$0x3] }
  0x4a   : > { %v277_v57 = vmax.f32 %v275_v41, %v276_v49  ;;  %v284_v58 = vmax.f32 %v282_v42, %v283_v50  ;;  %v297_v59 = vrot.slane %v296_v51, 2  ;;  %vm520_vm7 = vcmask 1047559   ;;  %v185_v29 = vld [vmem:[%s982_s4 + $0x3c] sm:$0x3]  ;;  %v186_v30 = vld [vmem:[%s982_s4 + $0x3e] sm:$0x3] }
  0x4b   : > { %v264_v62 = vrot.slane %v263_v52, 1  ;;  %v271_v63 = vrot.slane %v270_v53, 1  ;;  %v291_v0 = vmax.f32 %v289_v46, %v290_v54  ;;  %v303_v1 = vmax.f32 %v301_v47, %v302_v55  ;;  %s766_s13 = scalar_lea.vmem %s1118_s29, 512  ;;  %p1184_p9 = scmp.ne.s32.totalorder %s1180_s19, 0 }
  0x4c   : > { %v258_v5 = vmax.f32 %v256_v48, %v257_v56  ;;  %v278_v6 = vrot.slane %v277_v57, 1  ;;  %v285_v7 = vrot.slane %v284_v58, 1  ;;  %v298_v8 = vmax.f32 %v296_v51, %v297_v59  ;;  %p767_p8 = scmp.ne.s32.totalorder %s1118_s29, %s766_s13  ;;  %s853_s15 = smov [#allocation5]  }
  0x4d   : > { %v265_v12 = vmax.f32 %v263_v52, %v264_v62  ;;  %v272_v13 = vmax.f32 %v270_v53, %v271_v63  ;;  %v292_v14 = vrot.slane %v291_v0, 1  ;;  %v304_v15 = vrot.slane %v303_v1, 2  ;;  %s770_s16 = sshll.u32 %s853_s15, 4  ;;  %s771_s16 = int_to_ptr.vmem [resolvable:$false] %s770_s16 }
  0x4e   : > { %v279_v19 = vmax.f32 %v277_v57, %v278_v6  ;;  %v286_v20 = vmax.f32 %v284_v58, %v285_v7  ;;  %v299_v21 = vrot.slane %v298_v8, 1  ;;  %v227_v24 = vmax.f32 %v171_v60, %v179_v4  ;;  %p768_p11 = pnand %p767_p8, %p1184_p9  ;;  %s772_s17 = scalar_lea.vmem %s771_s16, 1024 }
  0x4f   : > { %v293_v25 = vmax.f32 %v291_v0, %v292_v14  ;;  %v305_v26 = vmax.f32 %v303_v1, %v304_v15  ;;  %v509_v27 = vsel %vm508_vm1, %v265_v12, %v258_v5  ;;  %v228_v31 = vmax.f32 %v172_v61, %v180_v11  ;;  %p773_p6 = scmp.lt.s32.totalorder %s1118_s29, %s771_s16  ;;  %p774_p13 = scmp.lt.s32.totalorder %s772_s17, %s766_s13 }
  0x50   : > { %v300_v32 = vmax.f32 %v298_v8, %v299_v21  ;;  %v511_v33 = vsel %vm510_vm2, %v272_v13, %v509_v27  ;;  %v229_v34 = vmax.f32 %v173_v2, %v181_v17  ;;  %v230_v35 = vmax.f32 %v174_v3, %v182_v18  ;;  %v195_v21 = vld [vmem:[%s982_s4 + $0x50] sm:$0x3]  ;;  %v189_v27 = vld [vmem:[%s982_s4 + $0x44] sm:$0x3]  ;;  %p769_p0 = pneg %p768_p11 }
  0x51   : > { %v306_v36 = vrot.slane %v305_v26, 1  ;;  %v513_v37 = vsel %vm512_vm3, %v279_v19, %v511_v33  ;;  %v231_v38 = vmax.f32 %v175_v9, %v183_v22  ;;  %v232_v39 = vmax.f32 %v176_v10, %v184_v23  ;;  %v191_v33 = vld [vmem:[%s982_s4 + $0x48] sm:$0x3]  ;;  %p775_p2 = por %p774_p13, %p773_p6 }
  0x52   : > { %v515_v40 = vsel %vm514_vm4, %v286_v20, %v513_v37  ;;  %v233_v41 = vmax.f32 %v177_v16, %v185_v29  ;;  %v234_v42 = vmax.f32 %v178_v28, %v186_v30  ;;  %v308_v43 = vsel %vm251_vm0, %v227_v24, -inf  ;;  %v187_v16 = vld [vmem:[%s982_s4 + $0x40] sm:$0x3] }
  0x53   : > { %v307_v44 = vmax.f32 %v305_v26, %v306_v36  ;;  %v517_v45 = vsel %vm516_vm5, %v293_v25, %v515_v40  ;;  %v309_v46 = vrot.slane %v308_v43, 4  ;;  %v315_v47 = vsel %vm251_vm0, %v228_v31, -inf  ;;  %v188_v26 = vld [vmem:[%s982_s4 + $0x42] sm:$0x3]  ;;  %v197_v36 = vld [vmem:[%s982_s4 + $0x54] sm:$0x3]  ;;  %p776_p5 = pnand %p775_p2, %p769_p0 }
  0x54   : > { %v519_v48 = vsel %vm518_vm6, %v300_v32, %v517_v45  ;;  %v316_v49 = vrot.slane %v315_v47, 4  ;;  %v322_v50 = vsel %vm251_vm0, %v229_v34, -inf  ;;  %v329_v51 = vsel %vm251_vm0, %v230_v35, -inf  ;;  %v190_v32 = vld [vmem:[%s982_s4 + $0x46] sm:$0x3] }
  0x55   : > { %v521_v52 = vsel %vm520_vm7, %v307_v44, %v519_v48  ;;  %v310_v53 = vmax.f32 %v308_v43, %v309_v46  ;;  %v323_v54 = vrot.slane %v322_v50, 4  ;;  %v330_v55 = vrot.slane %v329_v51, 4  ;;  %v192_v34 = vld [vmem:[%s982_s4 + $0x4a] sm:$0x3]  ;;  %v196_v35 = vld [vmem:[%s982_s4 + $0x52] sm:$0x3] }
  0x56   : > { %547 = vst [vmem:[%s1040_s27] sm:$0xff] %v521_v52  ;;  %v317_v56 = vmax.f32 %v315_v47, %v316_v49  ;;  %v336_v57 = vsel %vm251_vm0, %v231_v38, -inf  ;;  %v343_v58 = vsel %vm251_vm0, %v232_v39, -inf  ;;  %v350_v59 = vsel %vm251_vm0, %v233_v41, -inf  ;;  %v193_v40 = vld [vmem:[%s982_s4 + $0x4c] sm:$0x3] }
  0x57   : > { %v311_v60 = vrot.slane %v310_v53, 2  ;;  %v324_v61 = vmax.f32 %v322_v50, %v323_v54  ;;  %v331_v62 = vmax.f32 %v329_v51, %v330_v55  ;;  %v337_v63 = vrot.slane %v336_v57, 4  ;;  %v198_v41 = vld [vmem:[%s982_s4 + $0x56] sm:$0x3]  ;;  %v199_v47 = vld [vmem:[%s982_s4 + $0x58] sm:$0x3] }
  0x58   : > { %v318_v0 = vrot.slane %v317_v56, 2  ;;  %v344_v1 = vrot.slane %v343_v58, 4  ;;  %v351_v2 = vrot.slane %v350_v59, 4  ;;  %v357_v3 = vsel %vm251_vm0, %v234_v42, -inf  ;;  %v200_v48 = vld [vmem:[%s982_s4 + $0x5a] sm:$0x3] }
  0x59   : > { %v312_v4 = vmax.f32 %v310_v53, %v311_v60  ;;  %v325_v5 = vrot.slane %v324_v61, 2  ;;  %v332_v6 = vrot.slane %v331_v62, 2  ;;  %v338_v7 = vmax.f32 %v336_v57, %v337_v63  ;;  %v194_v51 = vld [vmem:[%s982_s4 + $0x4e] sm:$0x3]  ;;  %v201_v52 = vld [vmem:[%s982_s4 + $0x5c] sm:$0x3] }
  0x5a   : > { %v319_v8 = vmax.f32 %v317_v56, %v318_v0  ;;  %v345_v9 = vmax.f32 %v343_v58, %v344_v1  ;;  %v352_v10 = vmax.f32 %v350_v59, %v351_v2  ;;  %v358_v11 = vrot.slane %v357_v3, 4  ;;  %v202_v53 = vld [vmem:[%s982_s4 + $0x5e] sm:$0x3] }
  0x5b   : > { %v313_v12 = vrot.slane %v312_v4, 1  ;;  %v326_v13 = vmax.f32 %v324_v61, %v325_v5  ;;  %v333_v14 = vmax.f32 %v331_v62, %v332_v6  ;;  %v339_v15 = vrot.slane %v338_v7, 2 }
  0x5c   : > { %v320_v17 = vrot.slane %v319_v8, 1  ;;  %v346_v18 = vrot.slane %v345_v9, 2  ;;  %v353_v19 = vrot.slane %v352_v10, 2  ;;  %v359_v20 = vmax.f32 %v357_v3, %v358_v11 }
  0x5d   : > { %v314_v22 = vmax.f32 %v312_v4, %v313_v12  ;;  %v327_v23 = vrot.slane %v326_v13, 1  ;;  %v334_v24 = vrot.slane %v333_v14, 1  ;;  %v340_v25 = vmax.f32 %v338_v7, %v339_v15 }
  0x5e   : > { %v321_v28 = vmax.f32 %v319_v8, %v320_v17  ;;  %v347_v29 = vmax.f32 %v345_v9, %v346_v18  ;;  %v354_v30 = vmax.f32 %v352_v10, %v353_v19  ;;  %v360_v31 = vrot.slane %v359_v20, 2 }
  0x5f   : > { %v328_v37 = vmax.f32 %v326_v13, %v327_v23  ;;  %v335_v38 = vmax.f32 %v333_v14, %v334_v24  ;;  %v341_v39 = vrot.slane %v340_v25, 1  ;;  %v235_v42 = vmax.f32 %v187_v16, %v195_v21 }
  0x60   : > { %v348_v43 = vrot.slane %v347_v29, 1  ;;  %v355_v44 = vrot.slane %v354_v30, 1  ;;  %v361_v45 = vmax.f32 %v359_v20, %v360_v31  ;;  %v522_v46 = vsel %vm508_vm1, %v321_v28, %v314_v22 }
  0x61   : > { %v342_v49 = vmax.f32 %v340_v25, %v341_v39  ;;  %v523_v50 = vsel %vm510_vm2, %v328_v37, %v522_v46  ;;  %v236_v54 = vmax.f32 %v188_v26, %v196_v35  ;;  %v237_v55 = vmax.f32 %v189_v27, %v197_v36 }
  0x62   : > { %v349_v56 = vmax.f32 %v347_v29, %v348_v43  ;;  %v356_v57 = vmax.f32 %v354_v30, %v355_v44  ;;  %v362_v58 = vrot.slane %v361_v45, 1  ;;  %v524_v59 = vsel %vm512_vm3, %v335_v38, %v523_v50  ;;  %v205_v50 = vld [vmem:[%s982_s4 + $0x64] sm:$0x3] }
  0x63   : > { %v525_v60 = vsel %vm514_vm4, %v342_v49, %v524_v59  ;;  %v238_v61 = vmax.f32 %v190_v32, %v198_v41  ;;  %v239_v62 = vmax.f32 %v191_v33, %v199_v47  ;;  %v240_v63 = vmax.f32 %v192_v34, %v200_v48  ;;  %v208_v59 = vld [vmem:[%s982_s4 + $0x6a] sm:$0x3] }
  0x64   : > { %v363_v0 = vmax.f32 %v361_v45, %v362_v58  ;;  %v526_v1 = vsel %vm516_vm5, %v349_v56, %v525_v60  ;;  %v241_v2 = vmax.f32 %v193_v40, %v201_v52  ;;  %v242_v3 = vmax.f32 %v194_v51, %v202_v53  ;;  %v203_v40 = vld [vmem:[%s982_s4 + $0x60] sm:$0x3]  ;;  %v204_v45 = vld [vmem:[%s982_s4 + $0x62] sm:$0x3]  ;;  %v206_v51 = vld [vmem:[%s982_s4 + $0x66] sm:$0x3] }
  0x65   : > { %v527_v4 = vsel %vm518_vm6, %v356_v57, %v526_v1  ;;  %v364_v5 = vsel %vm251_vm0, %v235_v42, -inf  ;;  %v371_v6 = vsel %vm251_vm0, %v236_v54, -inf  ;;  %v378_v7 = vsel %vm251_vm0, %v237_v55, -inf  ;;  %v207_v52 = vld [vmem:[%s982_s4 + $0x68] sm:$0x3] }
  0x66   : > { %v528_v8 = vsel %vm520_vm7, %v363_v0, %v527_v4  ;;  %v365_v9 = vrot.slane %v364_v5, 4  ;;  %v372_v10 = vrot.slane %v371_v6, 4  ;;  %v379_v11 = vrot.slane %v378_v7, 4  ;;  %v211_v53 = vld [vmem:[%s982_s4 + $0x70] sm:$0x3] }
  0x67   : > { %548 = vst [vmem:[%s1040_s27 + $0x8] sm:$0xff] %v528_v8  ;;  %v385_v12 = vsel %vm251_vm0, %v238_v61, -inf  ;;  %v392_v13 = vsel %vm251_vm0, %v239_v62, -inf  ;;  %v399_v14 = vsel %vm251_vm0, %v240_v63, -inf  ;;  %v406_v15 = vsel %vm251_vm0, %v241_v2, -inf }
  0x68   : > { %v366_v16 = vmax.f32 %v364_v5, %v365_v9  ;;  %v373_v17 = vmax.f32 %v371_v6, %v372_v10  ;;  %v380_v18 = vmax.f32 %v378_v7, %v379_v11  ;;  %v386_v19 = vrot.slane %v385_v12, 4  ;;  %v212_v54 = vld [vmem:[%s982_s4 + $0x72] sm:$0x3]  ;;  %v213_v60 = vld [vmem:[%s982_s4 + $0x74] sm:$0x3] }
  0x69   : > { %v393_v20 = vrot.slane %v392_v13, 4  ;;  %v400_v21 = vrot.slane %v399_v14, 4  ;;  %v407_v22 = vrot.slane %v406_v15, 4  ;;  %v413_v23 = vsel %vm251_vm0, %v242_v3, -inf  ;;  %v214_v61 = vld [vmem:[%s982_s4 + $0x76] sm:$0x3] }
  0x6a   : > { %v367_v24 = vrot.slane %v366_v16, 2  ;;  %v374_v25 = vrot.slane %v373_v17, 2  ;;  %v381_v26 = vrot.slane %v380_v18, 2  ;;  %v387_v27 = vmax.f32 %v385_v12, %v386_v19  ;;  %v215_v2 = vld [vmem:[%s982_s4 + $0x78] sm:$0x3] }
  0x6b   : > { %v394_v28 = vmax.f32 %v392_v13, %v393_v20  ;;  %v401_v29 = vmax.f32 %v399_v14, %v400_v21  ;;  %v408_v30 = vmax.f32 %v406_v15, %v407_v22  ;;  %v414_v31 = vrot.slane %v413_v23, 4  ;;  %v209_v5 = vld [vmem:[%s982_s4 + $0x6c] sm:$0x3]  ;;  %v216_v6 = vld [vmem:[%s982_s4 + $0x7a] sm:$0x3] }
  0x6c   : > { %v368_v32 = vmax.f32 %v366_v16, %v367_v24  ;;  %v375_v33 = vmax.f32 %v373_v17, %v374_v25  ;;  %v382_v34 = vmax.f32 %v380_v18, %v381_v26  ;;  %v388_v35 = vrot.slane %v387_v27, 2  ;;  %v217_v7 = vld [vmem:[%s982_s4 + $0x7c] sm:$0x3]  ;;  %v210_v14 = vld [vmem:[%s982_s4 + $0x6e] sm:$0x3] }
  0x6d   : > { %v395_v36 = vrot.slane %v394_v28, 2  ;;  %v402_v37 = vrot.slane %v401_v29, 2  ;;  %v409_v38 = vrot.slane %v408_v30, 2  ;;  %v415_v39 = vmax.f32 %v413_v23, %v414_v31  ;;  %v218_v15 = vld [vmem:[%s982_s4 + $0x7e] sm:$0x3] }
  0x6e   : > { %v369_v41 = vrot.slane %v368_v32, 1  ;;  %v376_v42 = vrot.slane %v375_v33, 1  ;;  %v383_v43 = vrot.slane %v382_v34, 1  ;;  %v389_v44 = vmax.f32 %v387_v27, %v388_v35 }
  0x6f   : > { %v396_v46 = vmax.f32 %v394_v28, %v395_v36  ;;  %v403_v47 = vmax.f32 %v401_v29, %v402_v37  ;;  %v410_v48 = vmax.f32 %v408_v30, %v409_v38  ;;  %v416_v49 = vrot.slane %v415_v39, 2 }
  0x70   : > { %v370_v55 = vmax.f32 %v368_v32, %v369_v41  ;;  %v377_v56 = vmax.f32 %v375_v33, %v376_v42  ;;  %v384_v57 = vmax.f32 %v382_v34, %v383_v43  ;;  %v390_v58 = vrot.slane %v389_v44, 1 }
  0x71   : > { %v397_v62 = vrot.slane %v396_v46, 1  ;;  %v404_v63 = vrot.slane %v403_v47, 1  ;;  %v411_v0 = vrot.slane %v410_v48, 1  ;;  %v417_v1 = vmax.f32 %v415_v39, %v416_v49 }
  0x72   : > { %v391_v3 = vmax.f32 %v389_v44, %v390_v58  ;;  %v529_v4 = vsel %vm508_vm1, %v377_v56, %v370_v55  ;;  %v243_v8 = vmax.f32 %v203_v40, %v211_v53  ;;  %v244_v9 = vmax.f32 %v204_v45, %v212_v54 }
  0x73   : > { %v398_v10 = vmax.f32 %v396_v46, %v397_v62  ;;  %v405_v11 = vmax.f32 %v403_v47, %v404_v63  ;;  %v412_v12 = vmax.f32 %v410_v48, %v411_v0  ;;  %v418_v13 = vrot.slane %v417_v1, 1 }
  0x74   : > { %v530_v16 = vsel %vm510_vm2, %v384_v57, %v529_v4  ;;  %v245_v17 = vmax.f32 %v205_v50, %v213_v60  ;;  %v246_v18 = vmax.f32 %v206_v51, %v214_v61  ;;  %v247_v19 = vmax.f32 %v207_v52, %v215_v2 }
  0x75   : > { %v419_v20 = vmax.f32 %v417_v1, %v418_v13  ;;  %v531_v21 = vsel %vm512_vm3, %v391_v3, %v530_v16  ;;  %v248_v22 = vmax.f32 %v208_v59, %v216_v6  ;;  %v249_v23 = vmax.f32 %v209_v5, %v217_v7 }
  0x76   : > { %v532_v24 = vsel %vm514_vm4, %v398_v10, %v531_v21  ;;  %v250_v25 = vmax.f32 %v210_v14, %v218_v15  ;;  %v420_v26 = vsel %vm251_vm0, %v243_v8, -inf  ;;  %v427_v27 = vsel %vm251_vm0, %v244_v9, -inf }
  0x77   : > { %v533_v28 = vsel %vm516_vm5, %v405_v11, %v532_v24  ;;  %v421_v29 = vrot.slane %v420_v26, 4  ;;  %v428_v30 = vrot.slane %v427_v27, 4  ;;  %v434_v31 = vsel %vm251_vm0, %v245_v17, -inf }
  0x78   : > { %v534_v32 = vsel %vm518_vm6, %v412_v12, %v533_v28  ;;  %v435_v33 = vrot.slane %v434_v31, 4  ;;  %v441_v34 = vsel %vm251_vm0, %v246_v18, -inf  ;;  %v448_v35 = vsel %vm251_vm0, %v247_v19, -inf }
  0x79   : > { %v535_v36 = vsel %vm520_vm7, %v419_v20, %v534_v32  ;;  %v422_v37 = vmax.f32 %v420_v26, %v421_v29  ;;  %v429_v38 = vmax.f32 %v427_v27, %v428_v30  ;;  %v442_v39 = vrot.slane %v441_v34, 4 }
  0x7a   : > { %549 = vst [vmem:[%s1040_s27 + $0x10] sm:$0xff] %v535_v36  ;;  %v436_v40 = vmax.f32 %v434_v31, %v435_v33  ;;  %v449_v41 = vrot.slane %v448_v35, 4  ;;  %v455_v42 = vsel %vm251_vm0, %v248_v22, -inf  ;;  %v462_v43 = vsel %vm251_vm0, %v249_v23, -inf }
  0x7b   : > { %v423_v44 = vrot.slane %v422_v37, 2  ;;  %v430_v45 = vrot.slane %v429_v38, 2  ;;  %v443_v46 = vmax.f32 %v441_v34, %v442_v39  ;;  %v456_v47 = vrot.slane %v455_v42, 4 }
  0x7c   : > { %v437_v48 = vrot.slane %v436_v40, 2  ;;  %v450_v49 = vmax.f32 %v448_v35, %v449_v41  ;;  %v463_v50 = vrot.slane %v462_v43, 4  ;;  %v469_v51 = vsel %vm251_vm0, %v250_v25, -inf }
  0x7d   : > { %v424_v52 = vmax.f32 %v422_v37, %v423_v44  ;;  %v431_v53 = vmax.f32 %v429_v38, %v430_v45  ;;  %v444_v54 = vrot.slane %v443_v46, 2  ;;  %v457_v55 = vmax.f32 %v455_v42, %v456_v47 }
  0x7e   : > { %v438_v56 = vmax.f32 %v436_v40, %v437_v48  ;;  %v451_v57 = vrot.slane %v450_v49, 2  ;;  %v464_v58 = vmax.f32 %v462_v43, %v463_v50  ;;  %v470_v59 = vrot.slane %v469_v51, 4 }
  0x7f   : > { %v425_v60 = vrot.slane %v424_v52, 1  ;;  %v432_v61 = vrot.slane %v431_v53, 1  ;;  %v445_v62 = vmax.f32 %v443_v46, %v444_v54  ;;  %v458_v63 = vrot.slane %v457_v55, 2 }
  0x80   : > { %v439_v0 = vrot.slane %v438_v56, 1  ;;  %v452_v1 = vmax.f32 %v450_v49, %v451_v57  ;;  %v465_v2 = vrot.slane %v464_v58, 2  ;;  %v471_v3 = vmax.f32 %v469_v51, %v470_v59 }
  0x81   : > { %v426_v4 = vmax.f32 %v424_v52, %v425_v60  ;;  %v433_v5 = vmax.f32 %v431_v53, %v432_v61  ;;  %v446_v6 = vrot.slane %v445_v62, 1  ;;  %v459_v7 = vmax.f32 %v457_v55, %v458_v63 }
  0x82   : > { %v440_v8 = vmax.f32 %v438_v56, %v439_v0  ;;  %v453_v9 = vrot.slane %v452_v1, 1  ;;  %v466_v10 = vmax.f32 %v464_v58, %v465_v2  ;;  %v472_v11 = vrot.slane %v471_v3, 2 }
  0x83   : > { %v447_v12 = vmax.f32 %v445_v62, %v446_v6  ;;  %v460_v13 = vrot.slane %v459_v7, 1  ;;  %v536_v14 = vsel %vm508_vm1, %v433_v5, %v426_v4 }
  0x84   : > { %v454_v15 = vmax.f32 %v452_v1, %v453_v9  ;;  %v467_v16 = vrot.slane %v466_v10, 1  ;;  %v473_v17 = vmax.f32 %v471_v3, %v472_v11  ;;  %v537_v18 = vsel %vm510_vm2, %v440_v8, %v536_v14 }
  0x85   : > { %v461_v19 = vmax.f32 %v459_v7, %v460_v13  ;;  %v538_v20 = vsel %vm512_vm3, %v447_v12, %v537_v18 }
  0x86   : > { %v468_v21 = vmax.f32 %v466_v10, %v467_v16  ;;  %v474_v22 = vrot.slane %v473_v17, 1  ;;  %v539_v23 = vsel %vm514_vm4, %v454_v15, %v538_v20 }
  0x87   : > { %v540_v24 = vsel %vm516_vm5, %v461_v19, %v539_v23 }
  0x88   : > { %v475_v25 = vmax.f32 %v473_v17, %v474_v22  ;;  %v541_v26 = vsel %vm518_vm6, %v468_v21, %v540_v24 }
  0x8a   : > { %v542_v27 = vsel %vm520_vm7, %v475_v25, %v541_v26 }
  0x8b   : > { %550 = vst [vmem:[%s1040_s27 + $0x18] sm:$0xff] %v542_v27 }
  0x8c   : > { %779 = shalt.err (!%p776_p5)
}
  0x8d   : > { %s780_s22 = scalar_lea.hbm %s1124_s12, 512  ;;  %s784_s25 = scalar_lea.hbm %s1176_s1, 1024 }
  0x8e   : > { %p781_p4 = scmp.ne.s32.totalorder %s1124_s12, %s780_s22  ;;  %p785_p12 = scmp.lt.u32.totalorder %s1124_s12, %s1176_s1 }
  0x8f   : > { %p786_p1 = scmp.lt.u32.totalorder %s784_s25, %s780_s22  ;;  %p788_p8 = scmp.lt.u32.totalorder %s780_s22, %s1124_s12 }
  0x90   : > { %p782_p7 = pnand %p781_p4, %p1184_p9 }
  0x91   : > { %p787_p3 = por %p786_p1, %p785_p12 }
  0x92   : > { %p783_p10 = pneg %p782_p7 }
  0x93   : > { %p789_p11 = por %p788_p8, %p787_p3 }
  0x95   : > { %p790_p0 = pnand %p789_p11, %p783_p10 }
  0x97   : > { %793 = shalt.err (!%p790_p0)
}
  0x98   : > { %s854_s4 = smov 128   ;;  %s855_s18 = smov 8  }
  0x99   : > { %672 = dma.vmem_to_hbm [thread:$0]  (%p1184_p9), %s1118_s29, 512, %s1124_s12, %s552_s9, %s854_s4, %s854_s4, %s855_s18  }
  0x9a PF: > { %s581_s27 = sand.u32 1, %s828_s6   ;;  %p1185_p6 = scmp.ne.s32.totalorder %s1181_s21, 0 }
  0x9b   : > { %p1186_p13 = scmp.ge.s32.totalorder %s848_s11, 2  ;;  %s582_s30 = scalar_lea.sflag [#allocation4], %s581_s27 }
  0x9d   : > { %p679_p2 = pnand %p1186_p13, %p1185_p6 }
  0x9f   : > { %823 = dma.done.wait (!%p679_p2), %s582_s30, 512  }
  0xa0   : > { %825 = vsyncadd (!%p679_p2), %s582_s30, 4294966784  ;;  %s17_s11 = sadd.s32 1, %s848_s11   ;;  %s1187_s6 = smov %s832_s7 }
  0xa1   : > { %p14_p5 = scmp.ge.s32.totalorder %s17_s11, 4   ;;  %s1188_s7 = smov %s836_s8 }
  0xa2   : > { %s1189_s8 = smov %s922_s20  ;;  %s1190_s9 = smov %s844_s10 }
  0xa3   : > { %s1191_s10 = smov %s1193_s14  ;;  %16 = sbr.rel (!%p14_p5) target bundleno = 6 (0x6), region = 69 }
  0xaa   :  { %587 = vsyncpa [#allocation3], 1 }
  0xab   :  { %589 = vsyncpa [#allocation3 + $0x1], 1 }
  0xac   :  { %590 = vsyncpa [#allocation4], 1 }
  0xad   :  { %592 = vsyncpa [#allocation4 + $0x1], 1 }

</bundles_post_ra>
